<compile_context>
chip_gen: v5e
topology: v5e:2x2
jax: 0.10.0
libtpu: 0.0.40
codegen_flags: <defaults>
</compile_context>

<pallas_src>
import functools

import jax
import jax.numpy as jnp
from jax import lax
from jax.experimental import pallas as pl
from jax.experimental.pallas import tpu as pltpu

_LANE = 128
_SUBLANE = 8
_DEFAULT_TILE_ROWS = 512


def _round_up(x, m):
    return ((x + m - 1) // m) * m


@functools.lru_cache(maxsize=1)
def _vmem_limit_bytes():
    """Per-generation scoped-VMEM limit with ~25% headroom for compiler
    scratch / pipeline buffers / semaphores (v7x has only 64 MiB per TC)."""
    try:
        cap = int(pltpu.get_tpu_info().vmem_capacity_bytes)
    except Exception:  # interpret mode / query unavailable: be conservative.
        cap = 64 * 1024 * 1024
    return int(min(cap - cap // 4, 100 * 1024 * 1024))


def _pick_tile_rows(m_rows, c_in, n_out):
    """Row tile: large, but (a) at least 2 grid steps when M allows it so both
    v7x TensorCores get work, and (b) clamped so the double-buffered f32
    in/out tiles plus logits intermediates fit comfortably in VMEM."""
    t = min(_DEFAULT_TILE_ROWS,
            _round_up(max(-(-m_rows // 2), 1), _SUBLANE))
    per_row_bytes = 4 * (2 * c_in + 3 * n_out)  # 2x in bufs, 2x out bufs, logits
    budget = _vmem_limit_bytes() // 2
    while t > _SUBLANE and t * per_row_bytes > budget:
        t //= 2
    return _round_up(max(t, _SUBLANE), _SUBLANE)


def _head_kernel(x_ref, w_ref, b_ref, o_ref, *, channels_first):
    """One tile of o = softmax(x @ w + b, axis=-1).

    channels_first=False: x block (tile_rows, C), o block (tile_rows, N)
    channels_first=True : x block (1, C, tile),  o block (1, tile, N)
        (gtc NCHW features consumed without any HBM transpose: the MXU
         contracts the channel axis directly via an lhs-transposed matmul).
    """
    w = w_ref[...]                                    # (C, N) bf16, resident
    b = b_ref[...]                                    # (1, N) f32, resident

    if channels_first:
        xb = x_ref[0].astype(w.dtype)                 # (C, tile)
        logits = lax.dot_general(
            xb, w, (((0,), (0,)), ((), ())),
            preferred_element_type=jnp.float32)       # (tile, N)
    else:
        logits = jnp.dot(x_ref[...].astype(w.dtype), w,
                         preferred_element_type=jnp.float32)

    logits = logits + b

    # Numerically-stable row softmax, f32 throughout. Exact divide: cheap at
    # these widths and keeps rows summing to 1 for downstream log/compare.
    mx = jnp.max(logits, axis=-1, keepdims=True)
    e = jnp.exp(logits - mx)
    p = e / jnp.sum(e, axis=-1, keepdims=True)

    if channels_first:
        o_ref[0] = p.astype(o_ref.dtype)
    else:
        o_ref[...] = p.astype(o_ref.dtype)


def _linear_softmax_rows(x2d, w_bf16, b_row):
    """softmax(x2d @ w + b) for row-major x2d: (M, C) -> (M, N).

    cdiv grid over rows; Pallas masks the ragged last block on both the input
    read and the output writeback, so no wrapper-side pad/slice is needed.
    """
    M, C = x2d.shape
    Cw, N = w_bf16.shape
    assert C == Cw
    tile_rows = _pick_tile_rows(M, C, N)
    grid_m = pl.cdiv(M, tile_rows)

    return pl.pallas_call(
        functools.partial(_head_kernel, channels_first=False),
        out_shape=jax.ShapeDtypeStruct((M, N), jnp.float32),
        grid_spec=pltpu.PrefetchScalarGridSpec(
            num_scalar_prefetch=0,
            grid=(grid_m,),
            in_specs=[
                pl.BlockSpec((tile_rows, C), lambda i: (i, 0)),
                pl.BlockSpec((C, N), lambda i: (0, 0)),   # weight resident
                pl.BlockSpec((1, N), lambda i: (0, 0)),   # bias resident
            ],
            out_specs=pl.BlockSpec((tile_rows, N), lambda i: (i, 0)),
        ),
        compiler_params=pltpu.CompilerParams(
            dimension_semantics=("parallel",),
            vmem_limit_bytes=_vmem_limit_bytes()),
        cost_estimate=pl.CostEstimate(
            flops=2 * M * C * N,
            transcendentals=M * N,
            bytes_accessed=4 * M * C + 2 * C * N + 4 * N + 4 * M * N),
    )(x2d, w_bf16, b_row)


def _linear_softmax_cfirst(x3, w_bf16, b_row):
    """softmax over channels of channels-first x3: (B, C, HW) -> (B, HW, N).

    No HBM transpose: the kernel contracts the C axis of (C, tile) blocks.
    Only used when HW is a multiple of 128 (lane-dense spatial tiles).
    """
    B, C, HW = x3.shape
    Cw, N = w_bf16.shape
    assert C == Cw and HW % _LANE == 0

    tile = _LANE
    for cand in (_DEFAULT_TILE_ROWS, 256, _LANE):
        if HW % cand == 0:
            tile = cand
            break

    return pl.pallas_call(
        functools.partial(_head_kernel, channels_first=True),
        out_shape=jax.ShapeDtypeStruct((B, HW, N), jnp.float32),
        grid_spec=pltpu.PrefetchScalarGridSpec(
            num_scalar_prefetch=0,
            grid=(B, HW // tile),
            in_specs=[
                pl.BlockSpec((1, C, tile), lambda bb, j: (bb, 0, j)),
                pl.BlockSpec((C, N), lambda bb, j: (0, 0)),
                pl.BlockSpec((1, N), lambda bb, j: (0, 0)),
            ],
            out_specs=pl.BlockSpec((1, tile, N), lambda bb, j: (bb, j, 0)),
        ),
        compiler_params=pltpu.CompilerParams(
            dimension_semantics=("parallel", "parallel"),
            vmem_limit_bytes=_vmem_limit_bytes()),
        cost_estimate=pl.CostEstimate(
            flops=2 * B * HW * C * N,
            transcendentals=B * HW * N,
            bytes_accessed=4 * B * HW * C + 2 * C * N + 4 * N + 4 * B * HW * N),
    )(x3, w_bf16, b_row)


class GTCDecoderTwoPallas:
    """JAX/Pallas re-implementation of GTCDecoderTwo (eval mode, infer_gtc=True)."""

    def __init__(self, in_channels, out_channels, key, infer_gtc=True):
        self.infer_gtc = infer_gtc
        self.in_channels = in_channels
        self.n_gtc, self.n_ctc = out_channels
        k1, k2, k3, k4 = jax.random.split(key, 4)
        scale = 1.0 / float(in_channels) ** 0.5
        # PyTorch nn.Linear weight is (out, in); store transposed (in, out).
        self.w_gtc = jax.random.uniform(k1, (in_channels, self.n_gtc),
                                        jnp.float32, -scale, scale)
        self.b_gtc = jax.random.uniform(k2, (self.n_gtc,),
                                        jnp.float32, -scale, scale)
        self.w_ctc = jax.random.uniform(k3, (in_channels, self.n_ctc),
                                        jnp.float32, -scale, scale)
        self.b_ctc = jax.random.uniform(k4, (self.n_ctc,),
                                        jnp.float32, -scale, scale)
        # Kernel-side parameters: bf16 weights (cast once; halves weight HBM
        # traffic / VMEM residency, bf16 MXU rate), f32 bias as a (1, N) row.
        self._w_gtc = self.w_gtc.astype(jnp.bfloat16)
        self._w_ctc = self.w_ctc.astype(jnp.bfloat16)
        self._b_gtc = self.b_gtc.reshape(1, self.n_gtc)
        self._b_ctc = self.b_ctc.reshape(1, self.n_ctc)

    def __call__(self, x, data=None):
        x_ctc, x_gtc = x

        # --- ctc branch: softmax(Linear(x_ctc)) ---
        B, T, C = x_ctc.shape
        ctc_pred = _linear_softmax_rows(
            x_ctc.reshape(B * T, C), self._w_ctc, self._b_ctc
        ).reshape(B, T, self.n_ctc)

        if not self.infer_gtc:
            return ctc_pred

        # --- gtc branch: x_gtc.flatten(2).transpose(1, 2) + Linear + softmax ---
        Bg, Cg, H, W = x_gtc.shape
        HW = H * W
        if HW % _LANE == 0:
            # Lane-dense spatial tiles: transpose folded into the kernel (the
            # MXU contracts the channel axis), no HBM transpose pass.
            gtc_pred = _linear_softmax_cfirst(
                x_gtc.reshape(Bg, Cg, HW), self._w_gtc, self._b_gtc)
        else:
            # Small / ragged H*W: one tiny explicit transpose then the
            # lane-dense rows kernel (beats lane-sparse channels-first blocks
            # and a degenerate per-batch grid).
            seq = jnp.transpose(x_gtc.reshape(Bg, Cg, HW),
                                (0, 2, 1)).reshape(Bg * HW, Cg)
            gtc_pred = _linear_softmax_rows(
                seq, self._w_gtc, self._b_gtc).reshape(Bg, HW, self.n_gtc)

        return {'gtc_pred': gtc_pred, 'ctc_pred': ctc_pred}


def _reference(module, x):
    """Pure-JAX f32 reference for correctness check."""
    x_ctc, x_gtc = x
    ctc = jax.nn.softmax(x_ctc @ module.w_ctc + module.b_ctc, axis=-1)
    B, C, H, W = x_gtc.shape
    seq = jnp.transpose(x_gtc.reshape(B, C, H * W), (0, 2, 1))
    gtc = jax.nn.softmax(seq @ module.w_gtc + module.b_gtc, axis=-1)
    return {'gtc_pred': gtc, 'ctc_pred': ctc}


if __name__ == "__main__":
    key = jax.random.PRNGKey(0)
    k_in1, k_in2, k_par = jax.random.split(key, 3)

    in_channels = 32
    out_channels = (40, 48)   # (gtc_out, ctc_out)
    B, T = 2, 8               # ctc sequence feature
    H, W = 4, 4               # gtc spatial feature

    x_ctc = jax.random.normal(k_in1, (B, T, in_channels), jnp.float32)
    x_gtc = jax.random.normal(k_in2, (B, in_channels, H, W), jnp.float32)

    module = GTCDecoderTwoPallas(in_channels, out_channels, k_par,
                                 infer_gtc=True)

    out = module((x_ctc, x_gtc))
    out = jax.tree_util.tree_map(jax.block_until_ready, out)

    ref = _reference(module, (x_ctc, x_gtc))
    assert out['ctc_pred'].shape == (B, T, out_channels[1])
    assert out['gtc_pred'].shape == (B, H * W, out_channels[0])
    # bf16 matmul (f32 accumulation / softmax) => small tolerance slack.
    assert jnp.allclose(out['ctc_pred'], ref['ctc_pred'], atol=3e-3, rtol=0)
    assert jnp.allclose(out['gtc_pred'], ref['gtc_pred'], atol=3e-3, rtol=0)

    print("KERNEL_OK")
</pallas_src>

<mosaic_0001>
module attributes {stable_mosaic.version = 11 : i64} {
  func.func @_head_kernel(%arg0: i32, %arg1: memref<8x32xf32, #tpu.memory_space<vmem>>, %arg2: memref<32x48xbf16, #tpu.memory_space<vmem>>, %arg3: memref<1x48xf32, #tpu.memory_space<vmem>>, %arg4: memref<8x48xf32, #tpu.memory_space<vmem>>) attributes {dimension_semantics = [#tpu.dimension_semantics<parallel>], iteration_bounds = array<i64: 2>, scalar_prefetch = 0 : i64, scratch_operands = 0 : i64, tpu.core_type = #tpu.core_type<tc>, window_params = [{transform_indices = @transform_0, window_bounds = array<i64: 8, 32>}, {pipeline_mode = #tpu.pipeline_mode<synchronous>, transform_indices = @transform_1, window_bounds = array<i64: 32, 48>}, {pipeline_mode = #tpu.pipeline_mode<synchronous>, transform_indices = @transform_2, window_bounds = array<i64: 1, 48>}, {transform_indices = @transform_3, window_bounds = array<i64: 8, 48>}]} {
    %c0 = arith.constant 0 : index
    %c0_0 = arith.constant 0 : index
    %0 = vector.load %arg2[%c0, %c0_0] : memref<32x48xbf16, #tpu.memory_space<vmem>>, vector<32x48xbf16>
    %c0_1 = arith.constant 0 : index
    %c0_2 = arith.constant 0 : index
    %1 = vector.load %arg3[%c0_1, %c0_2] : memref<1x48xf32, #tpu.memory_space<vmem>>, vector<1x48xf32>
    %c0_3 = arith.constant 0 : index
    %c0_4 = arith.constant 0 : index
    %2 = vector.load %arg1[%c0_3, %c0_4] : memref<8x32xf32, #tpu.memory_space<vmem>>, vector<8x32xf32>
    %3 = arith.truncf %2 : vector<8x32xf32> to vector<8x32xbf16>
    %cst = arith.constant dense<0.000000e+00> : vector<8x48xf32>
    %4 = tpu.matmul %3, %0, %cst {dimension_numbers = #tpu.dot_dimension_numbers<[1], [0], [0], [1], [0, 0, 1, 1], [], []>} : vector<8x32xbf16>, vector<32x48xbf16>, vector<8x48xf32> -> vector<8x48xf32>
    %5 = vector.broadcast %1 : vector<1x48xf32> to vector<8x48xf32>
    %6 = arith.addf %4, %5 : vector<8x48xf32>
    %cst_5 = arith.constant dense<0xFF800000> : vector<8xf32>
    %7 = vector.multi_reduction <maximumf>, %6, %cst_5 [1] : vector<8x48xf32> to vector<8xf32>
    %8 = vector.shape_cast %7 : vector<8xf32> to vector<8x1xf32>
    %9 = vector.broadcast %8 : vector<8x1xf32> to vector<8x48xf32>
    %10 = arith.subf %6, %9 : vector<8x48xf32>
    %11 = math.exp %10 : vector<8x48xf32>
    %cst_6 = arith.constant dense<0.000000e+00> : vector<8xf32>
    %12 = vector.multi_reduction <add>, %11, %cst_6 [1] : vector<8x48xf32> to vector<8xf32>
    %13 = vector.shape_cast %12 : vector<8xf32> to vector<8x1xf32>
    %14 = vector.broadcast %13 : vector<8x1xf32> to vector<8x48xf32>
    %15 = arith.divf %11, %14 : vector<8x48xf32>
    %c0_7 = arith.constant 0 : index
    %c0_8 = arith.constant 0 : index
    %16 = vector.load %arg4[%c0_7, %c0_8] : memref<8x48xf32, #tpu.memory_space<vmem>>, vector<8x48xf32>
    tpu.vector_store %arg4[%c0_7, %c0_8], %15 {strides = array<i32>} : memref<8x48xf32, #tpu.memory_space<vmem>>, vector<8x48xf32>,
    return
  }
  func.func @transform_0(%arg0: i32) -> (i32, i32) {
    %c0_i32 = arith.constant 0 : i32
    %c0_i32_0 = arith.constant 0 : i32
    return %arg0, %c0_i32 : i32, i32
  }
  func.func @transform_1(%arg0: i32) -> (i32, i32) {
    %c0_i32 = arith.constant 0 : i32
    %c0_i32_0 = arith.constant 0 : i32
    %c0_i32_1 = arith.constant 0 : i32
    return %c0_i32, %c0_i32_0 : i32, i32
  }
  func.func @transform_2(%arg0: i32) -> (i32, i32) {
    %c0_i32 = arith.constant 0 : i32
    %c0_i32_0 = arith.constant 0 : i32
    %c0_i32_1 = arith.constant 0 : i32
    return %c0_i32, %c0_i32_0 : i32, i32
  }
  func.func @transform_3(%arg0: i32) -> (i32, i32) {
    %c0_i32 = arith.constant 0 : i32
    %c0_i32_0 = arith.constant 0 : i32
    return %arg0, %c0_i32 : i32, i32
  }
}

</mosaic_0001>

<bundles_post_ra>
// kernel: tpu_custom_call.1
= control target key start
LH: loop header
LB: loop body
LE: loop exit
PB: predicated region body
PF: predicated region fallthrough
CT: control target
= control target key end

     0   :  { %8 = vsyncpa [#allocation3], 0  ;;  %s757_s0 = inlined_call_operand.hbm [shape: f32[16,32], index: 0, kind: input, shape index: {}]   ;;  %s758_s1 = inlined_call_operand.hbm [shape: bf16[32,48], index: 1, kind: input, shape index: {}]   ;;  %s759_s2 = inlined_call_operand.vmem [shape: f32[1,48], index: 2, kind: input, shape index: {}]   ;;  %s760_s3 = inlined_call_operand.hbm [shape: f32[16,48], index: 3, kind: output, shape index: {}]  }
   0x1   :  { %10 = vsyncpa [#allocation3 + $0x1], 0 }
   0x2   :  { %11 = vsyncpa [#allocation6], 0 }
   0x3   :  { %12 = vsyncpa [#allocation4], 0 }
   0x4   :  { %14 = vsyncpa [#allocation4 + $0x1], 0  ;;  %s611_s12 = smov 0   ;;  %s613_s13 = smov 0  }
   0x5   :  { %s615_s14 = smov 0   ;;  %s617_s15 = smov 0  }
   0x6 LB: > { %s130_s18 = sshll.u32 %s758_s1, 4  ;;  %s635_s19 = sadd.s32 4294967295, %s586_s15   ;;  %s586_s15 = sphi %s617_s15, %s770_s15   ;;  %s582_s14 = sphi %s615_s14, %s769_s14   ;;  %s578_s13 = sphi %s613_s13, %s768_s13   ;;  %s574_s12 = sphi %s611_s12, %s767_s12   ;;  %s131_s18 = int_to_ptr.hbm [resolvable:$true] %s130_s18 }
   0x7   : > { %p368_p0 = scmp.ge.s32.totalorder %s586_s15, 1  ;;  %p41_p1 = scmp.eq.s32.totalorder %s635_s19, 0 }
   0x8   : > { %p119_p2 = scmp.lt.s32.totalorder %s586_s15, 3  ;;  %s588_s21 = smov [#allocation5]  }
   0x9   : > { %s132_s22 = sshll.u32 %s588_s21, 4  ;;  %s589_s23 = smov 64   ;;  %s133_s22 = int_to_ptr.vmem [resolvable:$true] %s132_s22 }
   0xa   : > { %p640_p3 = pnand %p368_p0, %p119_p2  ;;  %s590_s24 = smov 4  }
   0xb   : > { %s367_s25 = sadd.s32 4294967294, %s586_s15   ;;  %s651_s26 = sadd.s32 1, %s586_s15  }
   0xc   : > { %p400_p4 = pneg %p640_p3  ;;  %s27_s27 = sadd.s32 1, %s582_s14 }
   0xd   : > { %s24_s28 = ssub.s32 %s586_s15, %s651_s26  ;;  %p34_p7 = scmp.ne.s32.totalorder %s582_s14, %s578_s13 }
   0xe   : > { %p401_p6 = pnand %p400_p4, %p41_p1  ;;  %p25_p8 = scmp.eq.s32.totalorder %s24_s28, 0 }
   0xf   : > { %p35_p9 = scmp.eq.s32.totalorder %s586_s15, 0  ;;  %p40_p10 = scmp.ne.s32.totalorder %s578_s13, %s574_s12 }
  0x10   : > { %403 = dma.hbm_to_vmem [thread:$0]  (!%p401_p6), %s131_s18, 256, %s133_s22, [#allocation6], %s589_s23, %s589_s23, %s590_s24  }
  0x11   : > { %p106_p11 = scmp.eq.s32.totalorder %s635_s19, 1  ;;  %p667_p12 = por %p41_p1, %p40_p10 }
  0x12   : > { %s663_s29 = scalar_select %p25_p8, %s582_s14, %s27_s27  }
  0x13   : > { %p671_p13 = por %p106_p11, %p34_p7  ;;  %p112_p0 = scmp.eq.s32.totalorder %s367_s25, 1 }
  0x14   : > { %p36_p2 = por %p35_p9, %p34_p7  ;;  %s149_s5 = sand.u32 1, %s582_s14  }
  0x15   : > { %p676_p4 = por %p112_p0, %p40_p10  ;;  %p413_p6 = scmp.lt.s32.totalorder %s586_s15, 2 }
  0x16   : > { %s371_s7 = sshll.u32 %s149_s5, 3  ;;  %s372_s8 = sshll.u32 %s586_s15, 3 }
  0x17   : > { %s157_s11 = scalar_lea.hbm %s757_s0, %s372_s8  ;;  %s153_s17 = scalar_lea.vmem [#allocation2], %s371_s7 }
  0x18   : > { %s159_s16 = sshll.u32 %s157_s11, 4  ;;  %s161_s18 = sshll.u32 %s153_s17, 4  ;;  %s160_s16 = int_to_ptr.hbm [resolvable:$true] %s159_s16  ;;  %s162_s18 = int_to_ptr.vmem [resolvable:$true] %s161_s18 }
  0x19   : > { %p685_p8 = pnand %p413_p6, %p36_p2  ;;  %s150_s22 = scalar_lea.sflag [#allocation3], %s149_s5 }
  0x1a   : > { %s486_s23 = sshra.s32 %s160_s16, 4  ;;  %s493_s28 = scalar_lea.hbm %s757_s0, 16  ;;  %s487_s23 = int_to_ptr.hbm [resolvable:$true] %s486_s23 }
  0x1b   : > { %s488_s24 = scalar_lea.hbm %s487_s23, 8  ;;  %p490_p9 = pneg %p685_p8 }
  0x1c   : > { %p489_p7 = scmp.ne.s32.totalorder %s487_s23, %s488_s24  ;;  %p494_p0 = scmp.lt.s32.totalorder %s487_s23, %s757_s0 }
  0x1d   : > { %p495_p2 = scmp.lt.s32.totalorder %s493_s28, %s488_s24 }
  0x1e   : > { %p491_p10 = pnand %p490_p9, %p489_p7 }
  0x1f   : > { %p496_p6 = por %p495_p2, %p494_p0 }
  0x20   : > { %p492_p11 = pneg %p491_p10 }
  0x22   : > { %p497_p5 = pnand %p496_p6, %p492_p11 }
  0x24   : > { %500 = shalt.err (!%p497_p5)
}
  0x25   : > { %407 = dma.hbm_to_vmem [thread:$0]  (!%p685_p8), %s160_s16, 128, %s162_s18, %s150_s22  }
  0x26   : > { %170 = sbr.rel (%p640_p3) target bundleno = 449 (0x1c1), region = 32  ;;  %s702_s5 = sand.u32 (!%p640_p3), 1, %s578_s13  }
  0x27   : > { %s374_s9 = sshll.u32 (!%p640_p3), %s702_s5, 3  ;;  %s173_s10 = scalar_lea.sflag (!%p640_p3), [#allocation3], %s702_s5 }
  0x28   : > { %s176_s11 = scalar_lea.vmem (!%p640_p3), [#allocation2], %s374_s9 }
  0x2b   : > { %561 = dma.done.wait (%p667_p12), %s173_s10, 128  }
  0x2c   : > { %563 = vsyncadd (%p667_p12), %s173_s10, 4294967168 }
  0x2d   : > { %565 = dma.done.wait (%p41_p1), [#allocation6], 256  }
  0x2e   : > { %567 = vsyncadd (%p41_p1), [#allocation6], 4294967040  ;;  %v391_v0 = vld [vmem:[#allocation5 + $0x8] sm:$0xff]  ;;  %v390_v1 = vld [vmem:[#allocation5] sm:$0xff]  ;;  %vm228_vm0 = vcmask 261120   ;;  %vm245_vm1 = vcmask 392192  }
  0x2f   : > { %238 = vmatpush.bf16.msra.mxu0 %v391_v0  ;;  %v211_v2 = vld [vmem:[%s176_s11] sm:$0xff]  ;;  %s387_s30 = sshll.u32 %s635_s19, 3  ;;  %s204_s22 = scalar_lea.vmem [#allocation7], %s374_s9 }
  0x30   : > { %v212_v3 = vpack.c.bf16 %v211_v2, %v211_v2  ;;  %v451_v4 = vld [vmem:[%s759_s2] ss:$0 sm:$0xff]  ;;  %s282_s21 = scalar_lea.hbm %s760_s3, %s387_s30  ;;  %s284_s23 = sshll.u32 %s204_s22, 4  ;;  %s285_s23 = int_to_ptr.vmem [resolvable:$true] %s284_s23 }
  0x31   : > { %s286_s24 = sshll.u32 %s282_s21, 4  ;;  %s272_s19 = scalar_lea.sflag [#allocation4], %s702_s5  ;;  %s287_s24 = int_to_ptr.hbm [resolvable:$true] %s286_s24 }
  0x32   : > { %s530_s25 = sshra.s32 %s287_s24, 4  ;;  %s536_s8 = scalar_lea.hbm %s760_s3, 16  ;;  %s531_s25 = int_to_ptr.hbm [resolvable:$true] %s530_s25 }
  0x33   : > { %239 = vmatpush.bf16.msra.mxu0 %v390_v1  ;;  %s532_s27 = scalar_lea.hbm %s531_s25, 8  ;;  %p537_p12 = scmp.lt.s32.totalorder %s531_s25, %s760_s3 }
  0x34   : > { %p533_p1 = scmp.ne.s32.totalorder %s531_s25, %s532_s27  ;;  %p538_p8 = scmp.lt.s32.totalorder %s536_s8, %s532_s27 }
  0x36   : > { %385 = vmatmul.msk.bf16.vlgmr.msra.gmra.mxu0 %vm228_vm0, %v212_v3  ;;  %p534_p3 = pnand %p533_p1, %p671_p13  ;;  %p539_p7 = por %p538_p8, %p537_p12 }
  0x38   : > { %p535_p5 = pneg %p534_p3 }
  0x3a   : > { %p540_p9 = pnand %p539_p7, %p535_p5 }
  0xb3   : > { %v241_v5 = vpop.f32.mrf.mxu0 }
  0xb4   : > { %v242_v6 = vadd.f32 %v451_v4, %v241_v5 }
  0xb6   : > { %v246_v7 = vsel %vm245_vm1, %v242_v6, -inf }
  0xb7   : > { %247 = vmax.xlane.f32.xlu0 %v246_v7 }
  0xbb   : > { %v243_v8 = vpop.f32.mrf.mxu0 }
 0x12a   : > { %v248_v9 = vpop.xlane.xlu0 %247 }
 0x12b   : > { %v249_v10 = vsub.f32 %v242_v6, %v248_v9 }
 0x12d   : > { %v250_v11 = vmul.f32 1.442695, %v249_v10 }
 0x12f   : > { %452 = vpow2.f32 %v250_v11 }
 0x135   : > { %v453_v12 = vpop.eup %452 }
 0x136   : > { %v252_v13 = vsel %vm245_vm1, %v453_v12, 0.0 }
 0x137   : > { %253 = vadd.xlane.f32.xlu0 %v252_v13 }
 0x1aa   : > { %v254_v14 = vpop.xlane.xlu0 %253 }
 0x1ab   : > { %454 = vrcp.f32 %v254_v14  ;;  %v266_v18 = vand.u32 2147483648, %v254_v14  ;;  %v264_v20 = vand.u32 2147483647, %v254_v14  ;;  %vm260_vm3 = vweird.f32 %v254_v14 }
 0x1ad   : > { %v267_v22 = vor.u32 1.1754944e-38, %v266_v18  ;;  %vm265_vm5 = vcmp.eq.f32.partialorder %v264_v20, 8.507059e+37 }
 0x1b1   : > { %v455_v15 = vpop.eup %454 }
 0x1b2   : > { %v256_v16 = vmul.f32 %v455_v15, %v254_v14  ;;  %vm261_vm2 = vweird.f32 %v455_v15 }
 0x1b3   : > { %vm262_vm4 = vmor %vm260_vm3, %vm261_vm2 }
 0x1b4   : > { %v257_v17 = vsub.f32 1.0, %v256_v16 }
 0x1b6   : > { %v258_v19 = vmul.f32 %v455_v15, %v257_v17 }
 0x1b8   : > { %v259_v21 = vadd.f32 %v455_v15, %v258_v19 }
 0x1ba   : > { %v263_v23 = vsel %vm262_vm4, %v455_v15, %v259_v21 }
 0x1bb   : > { %v268_v24 = vsel %vm265_vm5, %v267_v22, %v263_v23 }
 0x1bc   : > { %v269_v25 = vmul.f32 %v453_v12, %v268_v24 }
 0x1be   : > { %270 = vst.msk [vmem:[%s204_s22] sm:$0xff] %vm245_vm1, %v269_v25 }
 0x1bf   : > { %543 = shalt.err (!%p540_p9)
}
 0x1c0   : > { %398 = dma.vmem_to_hbm [thread:$0]  (%p671_p13), %s285_s23, 128, %s287_s24, %s272_s19  }
 0x1c1 PF: > { %s298_s5 = sand.u32 1, %s574_s12   ;;  %p766_p10 = scmp.ge.s32.totalorder %s586_s15, 2 }
 0x1c2   : > { %s299_s11 = scalar_lea.sflag [#allocation4], %s298_s5 }
 0x1c3   : > { %p409_p11 = pnand %p766_p10, %p676_p4 }
 0x1c5   : > { %p410_p0 = pneg %p409_p11 }
 0x1c7   : > { %569 = dma.done.wait (%p410_p0), %s299_s11, 128  }
 0x1c8   : > { %571 = vsyncadd (%p410_p0), %s299_s11, 4294967168  ;;  %p17_p2 = scmp.ge.s32.totalorder %s651_s26, 4   ;;  %s767_s12 = smov %s578_s13 }
 0x1c9   : > { %s768_s13 = smov %s582_s14  ;;  %s769_s14 = smov %s663_s29 }
 0x1ca   : > { %s770_s15 = smov %s651_s26  ;;  %19 = sbr.rel (!%p17_p2) target bundleno = 6 (0x6), region = 81 }
 0x1cf   :  { %305 = vsyncpa [#allocation3], 1 }
 0x1d0   :  { %307 = vsyncpa [#allocation3 + $0x1], 1 }
 0x1d1   :  { %308 = vsyncpa [#allocation6], 1 }
 0x1d2   :  { %309 = vsyncpa [#allocation4], 1 }
 0x1d3   :  { %311 = vsyncpa [#allocation4 + $0x1], 1 }

</bundles_post_ra>
